<compile_context>
chip_gen: v7x
topology: tpu7x:2x2x1
jax: 0.10.0
libtpu: 0.0.40
codegen_flags: <defaults>
</compile_context>

<pallas_src>
import functools

import jax
import jax.numpy as jnp
from jax import lax
from jax.experimental import pallas as pl
from jax.experimental.pallas import tpu as pltpu

EPS = 1e-5
NEG_SLOPE = 0.2
# Scoped VMEM limit: review asks for larger tiles on v5e/v6e but <= ~48 MiB on
# v7x (64 MiB physical); the tile pickers target a much smaller block budget.
VMEM_LIMIT = 48 * 1024 * 1024
BLOCK_BUDGET = 24 * 1024 * 1024


def _pick_row_tile(H, W, Cin, Cout, d, budget_bytes):
    """Largest row tile TH dividing H with a lane-dense flat tile (TH*W % 128
    == 0, or TH == H) whose estimated VMEM footprint fits the budget."""
    cands = sorted({th for th in range(1, H + 1)
                    if H % th == 0 and (th == H or (th * W) % 128 == 0)})

    def est(th):
        fl = th * W
        slab = (th + 2 * d) * W + 2 * d
        x_blk = 2 * Cin * slab * 2          # double-buffered bf16 slab
        y_blk = 2 * Cout * fl * 2           # double-buffered bf16 y block
        acc = Cout * fl * 4                 # f32 accumulator
        col = 2 * 9 * Cin * fl * 2          # im2col pieces + concat (bf16)
        return x_blk + y_blk + acc + col + (1 << 20)

    ok = [th for th in cands if est(th) <= budget_bytes]
    return max(ok) if ok else min(cands)


def _pick_q_tile(HW, Cout, budget_bytes):
    """Largest multiple-of-128 divisor of HW fitting the budget (else HW)."""
    cands = [q for q in range(128, HW + 1, 128) if HW % q == 0]
    if not cands:
        return HW

    def est(q):
        return Cout * q * (2 * 2 + 2 * 4) + (1 << 20)

    ok = [q for q in cands if est(q) <= budget_bytes]
    return max(ok) if ok else min(cands)


# ----------------------------------------------------------------------------
# Pass 1: 3x3 dilated conv (stride 1), channel-major, + fused BN statistics.
# ----------------------------------------------------------------------------
def _conv_bnstats_kernel(x_ref, w_ref, m_ref, y_ref, sum_ref, ssq_ref,
                         *, W, d, FL, G):
    slab = x_ref[0, 0]                      # (Cin, S) bf16, lane-dense slab
    masks = m_ref[...]                      # (2, FL) bf16 0/1 column masks
    m_left = masks[0:1, :]                  # valid where col >= d
    m_right = masks[1:2, :]                 # valid where col <  W - d

    # The 9 dilated taps are contiguous lane-offset slices of the slab; zero
    # the columns that would otherwise wrap across image rows.
    pieces = []
    for kh in range(3):
        for kw in range(3):
            off = kh * d * W + kw * d
            p = slab[:, off:off + FL]       # (Cin, FL), static slice
            if kw == 0:
                p = p * m_left
            elif kw == 2:
                p = p * m_right
            pieces.append(p)

    # Tap-fused channel-major matmuls: acc(Cout, FL) = W(Cout, K) @ col(K, FL).
    cout = w_ref.shape[1]
    acc = jnp.zeros((cout, FL), jnp.float32)
    ng = 9 // G
    for g in range(ng):
        grp = pieces[g * G:(g + 1) * G]
        col = grp[0] if G == 1 else jnp.concatenate(grp, axis=0)  # (G*Cin, FL)
        acc = acc + jnp.dot(w_ref[g], col,
                            preferred_element_type=jnp.float32)

    # Per-block BN partial statistics from the f32 accumulator (written once
    # per grid step; combined in the wrapper).
    sum_ref[0, 0] = jnp.sum(acc, axis=1, keepdims=True)
    ssq_ref[0, 0] = jnp.sum(acc * acc, axis=1, keepdims=True)

    # y written directly in NCHW-flat, lane-dense, bf16 (no transpose).
    y_ref[0] = acc.astype(y_ref.dtype)


# ----------------------------------------------------------------------------
# Pass 2: per-channel affine (folded BN + AdaptiveNorm) + LeakyReLU.
# ----------------------------------------------------------------------------
def _affine_lrelu_kernel(a_ref, b_ref, y_ref, o_ref):
    z = a_ref[...] * y_ref[0].astype(jnp.float32) + b_ref[...]
    o_ref[0] = jnp.where(z >= 0, z, NEG_SLOPE * z).astype(o_ref.dtype)


# ----------------------------------------------------------------------------
# Full module: Compnent.forward
# ----------------------------------------------------------------------------
def compnent_forward(x_nchw, w_oihw, L, M, dilation=1, *,
                     row_tile=None, q_tile=None, block_budget=BLOCK_BUDGET):
    N, Cin, H, W = x_nchw.shape
    Cout = w_oihw.shape[0]
    d = int(dilation)
    assert d >= 1
    HW = H * W

    TH = row_tile if row_tile is not None else _pick_row_tile(
        H, W, Cin, Cout, d, block_budget)
    assert H % TH == 0 and (TH == H or (TH * W) % 128 == 0)
    HT = H // TH
    FL = TH * W                              # flat output pixels per tile
    S = (TH + 2 * d) * W + 2 * d             # haloed slab length

    # Tap-fusion group size along the contraction axis.
    if 9 * Cin <= 256:
        G = 9
    elif 3 * Cin <= 256:
        G = 3
    else:
        G = 1
    NG = 9 // G

    # --- inputs -------------------------------------------------------------
    # Channel-major flat pixels with row halo baked in as zero padding, then
    # one overlapping haloed slab per row tile (BlockSpec-friendly, lane-dense).
    x_flat = x_nchw.astype(jnp.bfloat16).reshape(N, Cin, HW)
    pad = d * W + d
    x_flat = jnp.pad(x_flat, ((0, 0), (0, 0), (pad, pad)))
    x_tiles = jnp.stack(
        [x_flat[:, :, h * TH * W: h * TH * W + S] for h in range(HT)],
        axis=1)                              # (N, HT, Cin, S)

    # Weights: (Cout, Cin, 3, 3) -> tap-major (NG, Cout, G*Cin), bf16.
    w9 = jnp.transpose(w_oihw, (0, 2, 3, 1)).reshape(Cout, 9 * Cin)
    w_g = jnp.transpose(w9.reshape(Cout, NG, G * Cin),
                        (1, 0, 2)).astype(jnp.bfloat16)

    # Column-validity masks for the left/right shifted taps (period W).
    col_idx = jnp.arange(FL, dtype=jnp.int32) % W
    masks = jnp.stack([col_idx >= d, col_idx < (W - d)]).astype(jnp.bfloat16)

    y_bf, sum_p, ssq_p = pl.pallas_call(
        functools.partial(_conv_bnstats_kernel, W=W, d=d, FL=FL, G=G),
        out_shape=(jax.ShapeDtypeStruct((N, Cout, HW), jnp.bfloat16),
                   jax.ShapeDtypeStruct((N, HT, Cout, 1), jnp.float32),
                   jax.ShapeDtypeStruct((N, HT, Cout, 1), jnp.float32)),
        grid_spec=pltpu.PrefetchScalarGridSpec(
            num_scalar_prefetch=0,
            grid=(N, HT),
            in_specs=[
                pl.BlockSpec((1, 1, Cin, S), lambda n, h: (n, h, 0, 0)),
                pl.BlockSpec((NG, Cout, G * Cin), lambda n, h: (0, 0, 0)),
                pl.BlockSpec((2, FL), lambda n, h: (0, 0)),
            ],
            out_specs=[
                pl.BlockSpec((1, Cout, FL), lambda n, h: (n, 0, h)),
                pl.BlockSpec((1, 1, Cout, 1), lambda n, h: (n, h, 0, 0)),
                pl.BlockSpec((1, 1, Cout, 1), lambda n, h: (n, h, 0, 0)),
            ]),
        compiler_params=pltpu.CompilerParams(
            dimension_semantics=("parallel", "parallel"),
            vmem_limit_bytes=VMEM_LIMIT),
    )(x_tiles, w_g, masks)

    # Finalize BatchNorm statistics (tiny) and fold everything into a single
    # per-channel scale/shift:  out = lrelu(L*y + M*(y-mean)*rsqrt(var+eps))
    #                               = lrelu(a_c*y + b_c).
    count = float(N * HW)
    tot = jnp.sum(sum_p, axis=(0, 1))                    # (Cout, 1)
    totsq = jnp.sum(ssq_p, axis=(0, 1))
    mean = tot / count
    var = jnp.maximum(totsq / count - mean * mean, 0.0)  # biased (training BN)
    inv = lax.rsqrt(var + EPS)
    a = (L[0] + M[0] * inv).astype(jnp.float32)          # (Cout, 1)
    b = (-M[0] * inv * mean).astype(jnp.float32)         # (Cout, 1)

    TQ = q_tile if q_tile is not None else _pick_q_tile(HW, Cout, block_budget)
    assert HW % TQ == 0 and (TQ == HW or TQ % 128 == 0)

    out_flat = pl.pallas_call(
        _affine_lrelu_kernel,
        out_shape=jax.ShapeDtypeStruct((N, Cout, HW), jnp.float32),
        grid_spec=pltpu.PrefetchScalarGridSpec(
            num_scalar_prefetch=0,
            grid=(N, HW // TQ),
            in_specs=[
                pl.BlockSpec((Cout, 1), lambda n, q: (0, 0)),
                pl.BlockSpec((Cout, 1), lambda n, q: (0, 0)),
                pl.BlockSpec((1, Cout, TQ), lambda n, q: (n, 0, q)),
            ],
            out_specs=pl.BlockSpec((1, Cout, TQ), lambda n, q: (n, 0, q))),
        compiler_params=pltpu.CompilerParams(
            dimension_semantics=("parallel", "parallel"),
            vmem_limit_bytes=VMEM_LIMIT),
    )(a, b, y_bf)

    # (N, Cout, H*W) -> (N, Cout, H, W): metadata-only reshape, no transpose.
    return out_flat.reshape(N, Cout, H, W)


# ----------------------------------------------------------------------------
# Pure-JAX reference (bf16 conv inputs with f32 accumulation to match the MXU;
# quantize_y mirrors the kernel's bf16 inter-pass activation).
# ----------------------------------------------------------------------------
def compnent_ref(x_nchw, w_oihw, L, M, dilation=1, quantize_y=True):
    d = int(dilation)
    x_nhwc = jnp.transpose(x_nchw, (0, 2, 3, 1)).astype(jnp.bfloat16)
    w_hwio = jnp.transpose(w_oihw, (2, 3, 1, 0)).astype(jnp.bfloat16)
    y = lax.conv_general_dilated(
        x_nhwc, w_hwio,
        window_strides=(1, 1),
        padding=[(d, d), (d, d)],
        rhs_dilation=(d, d),
        dimension_numbers=("NHWC", "HWIO", "NHWC"),
        preferred_element_type=jnp.float32)
    mean = jnp.mean(y, axis=(0, 1, 2), keepdims=True)
    var = jnp.mean((y - mean) ** 2, axis=(0, 1, 2), keepdims=True)
    inv = lax.rsqrt(var + EPS)
    yq = y.astype(jnp.bfloat16).astype(jnp.float32) if quantize_y else y
    z = L[0] * yq + M[0] * (yq - mean) * inv
    out = jnp.where(z >= 0, z, NEG_SLOPE * z)
    return jnp.transpose(out, (0, 3, 1, 2))


if __name__ == "__main__":
    key = jax.random.PRNGKey(0)
    k_x, k_w = jax.random.split(key)

    N, Cin, Cout, H, W = 2, 4, 8, 16, 16
    x = jax.random.normal(k_x, (N, Cin, H, W), dtype=jnp.float32)
    w = jax.random.normal(k_w, (Cout, Cin, 3, 3), dtype=jnp.float32) * 0.1
    # AdaptiveNorm parameters (nonzero M so the BatchNorm path is exercised).
    L = jnp.array([1.0], dtype=jnp.float32)
    M = jnp.array([0.5], dtype=jnp.float32)

    # Config 1: dilation=1, forced small tiles -> multi-tile pipelining.
    out1 = jax.block_until_ready(
        compnent_forward(x, w, L, M, dilation=1, row_tile=8, q_tile=128))
    assert out1.shape == (N, Cout, H, W), out1.shape
    ref1 = compnent_ref(x, w, L, M, dilation=1)
    err1 = float(jnp.max(jnp.abs(out1 - ref1)))
    assert err1 < 2e-3, err1
    ref1_f32 = compnent_ref(x, w, L, M, dilation=1, quantize_y=False)
    err1_f32 = float(jnp.max(jnp.abs(out1 - ref1_f32)))
    assert err1_f32 < 5e-2, err1_f32

    # Config 2: dilation=2, default (budget-picked, largest-fit) tiles.
    out2 = jax.block_until_ready(compnent_forward(x, w, L, M, dilation=2))
    ref2 = compnent_ref(x, w, L, M, dilation=2)
    err2 = float(jnp.max(jnp.abs(out2 - ref2)))
    assert err2 < 2e-3, err2

    print("KERNEL_OK")
</pallas_src>

<mosaic_0001>
module attributes {stable_mosaic.version = 11 : i64} {
  func.func @_conv_bnstats_kernel(%arg0: i32, %arg1: i32, %arg2: memref<1x1x4x162xbf16, #tpu.memory_space<vmem>>, %arg3: memref<1x8x36xbf16, #tpu.memory_space<vmem>>, %arg4: memref<2x128xbf16, #tpu.memory_space<vmem>>, %arg5: memref<1x8x128xbf16, #tpu.memory_space<vmem>>, %arg6: memref<1x1x8x1xf32, #tpu.memory_space<vmem>>, %arg7: memref<1x1x8x1xf32, #tpu.memory_space<vmem>>) attributes {dimension_semantics = [#tpu.dimension_semantics<parallel>, #tpu.dimension_semantics<parallel>], iteration_bounds = array<i64: 2, 2>, scalar_prefetch = 0 : i64, scratch_operands = 0 : i64, tpu.core_type = #tpu.core_type<tc>, window_params = [{transform_indices = @transform_0, window_bounds = array<i64: 1, 1, 4, 162>}, {pipeline_mode = #tpu.pipeline_mode<synchronous>, transform_indices = @transform_1, window_bounds = array<i64: 1, 8, 36>}, {pipeline_mode = #tpu.pipeline_mode<synchronous>, transform_indices = @transform_2, window_bounds = array<i64: 2, 128>}, {transform_indices = @transform_3, window_bounds = array<i64: 1, 8, 128>}, {transform_indices = @transform_4, window_bounds = array<i64: 1, 1, 8, 1>}, {transform_indices = @transform_5, window_bounds = array<i64: 1, 1, 8, 1>}]} {
    %c0 = arith.constant 0 : index
    %c0_0 = arith.constant 0 : index
    %c0_1 = arith.constant 0 : index
    %c0_2 = arith.constant 0 : index
    %0 = vector.load %arg2[%c0, %c0_0, %c0_1, %c0_2] : memref<1x1x4x162xbf16, #tpu.memory_space<vmem>>, vector<1x1x4x162xbf16>
    %1 = vector.shape_cast %0 : vector<1x1x4x162xbf16> to vector<4x162xbf16>
    %c0_3 = arith.constant 0 : index
    %c0_4 = arith.constant 0 : index
    %2 = vector.load %arg4[%c0_3, %c0_4] : memref<2x128xbf16, #tpu.memory_space<vmem>>, vector<2x128xbf16>
    %3 = vector.extract_strided_slice %2 {offsets = [0, 0], sizes = [1, 128], strides = [1, 1]} : vector<2x128xbf16> to vector<1x128xbf16>
    %4 = vector.extract_strided_slice %2 {offsets = [1, 0], sizes = [1, 128], strides = [1, 1]} : vector<2x128xbf16> to vector<1x128xbf16>
    %5 = vector.extract_strided_slice %1 {offsets = [0, 0], sizes = [4, 128], strides = [1, 1]} : vector<4x162xbf16> to vector<4x128xbf16>
    %6 = vector.broadcast %3 : vector<1x128xbf16> to vector<4x128xbf16>
    %7 = arith.mulf %5, %6 : vector<4x128xbf16>
    %8 = vector.extract_strided_slice %1 {offsets = [0, 1], sizes = [4, 128], strides = [1, 1]} : vector<4x162xbf16> to vector<4x128xbf16>
    %9 = vector.extract_strided_slice %1 {offsets = [0, 2], sizes = [4, 128], strides = [1, 1]} : vector<4x162xbf16> to vector<4x128xbf16>
    %10 = vector.broadcast %4 : vector<1x128xbf16> to vector<4x128xbf16>
    %11 = arith.mulf %9, %10 : vector<4x128xbf16>
    %12 = vector.extract_strided_slice %1 {offsets = [0, 16], sizes = [4, 128], strides = [1, 1]} : vector<4x162xbf16> to vector<4x128xbf16>
    %13 = vector.broadcast %3 : vector<1x128xbf16> to vector<4x128xbf16>
    %14 = arith.mulf %12, %13 : vector<4x128xbf16>
    %15 = vector.extract_strided_slice %1 {offsets = [0, 17], sizes = [4, 128], strides = [1, 1]} : vector<4x162xbf16> to vector<4x128xbf16>
    %16 = vector.extract_strided_slice %1 {offsets = [0, 18], sizes = [4, 128], strides = [1, 1]} : vector<4x162xbf16> to vector<4x128xbf16>
    %17 = vector.broadcast %4 : vector<1x128xbf16> to vector<4x128xbf16>
    %18 = arith.mulf %16, %17 : vector<4x128xbf16>
    %19 = vector.extract_strided_slice %1 {offsets = [0, 32], sizes = [4, 128], strides = [1, 1]} : vector<4x162xbf16> to vector<4x128xbf16>
    %20 = vector.broadcast %3 : vector<1x128xbf16> to vector<4x128xbf16>
    %21 = arith.mulf %19, %20 : vector<4x128xbf16>
    %22 = vector.extract_strided_slice %1 {offsets = [0, 33], sizes = [4, 128], strides = [1, 1]} : vector<4x162xbf16> to vector<4x128xbf16>
    %23 = vector.extract_strided_slice %1 {offsets = [0, 34], sizes = [4, 128], strides = [1, 1]} : vector<4x162xbf16> to vector<4x128xbf16>
    %24 = vector.broadcast %4 : vector<1x128xbf16> to vector<4x128xbf16>
    %25 = arith.mulf %23, %24 : vector<4x128xbf16>
    %cst = arith.constant 0.000000e+00 : f32
    %26 = vector.broadcast %cst : f32 to vector<8x128xf32>
    %27 = tpu.concatenate %7, %8, %11, %14, %15, %18, %21, %22, %25 in 0 : vector<4x128xbf16>, vector<4x128xbf16>, vector<4x128xbf16>, vector<4x128xbf16>, vector<4x128xbf16>, vector<4x128xbf16>, vector<4x128xbf16>, vector<4x128xbf16>, vector<4x128xbf16> -> vector<36x128xbf16>
    %c0_5 = arith.constant 0 : index
    %c0_6 = arith.constant 0 : index
    %c0_7 = arith.constant 0 : index
    %28 = vector.load %arg3[%c0_5, %c0_6, %c0_7] : memref<1x8x36xbf16, #tpu.memory_space<vmem>>, vector<1x8x36xbf16>
    %29 = vector.shape_cast %28 : vector<1x8x36xbf16> to vector<8x36xbf16>
    %cst_8 = arith.constant dense<0.000000e+00> : vector<8x128xf32>
    %30 = tpu.matmul %29, %27, %cst_8 {dimension_numbers = #tpu.dot_dimension_numbers<[1], [0], [0], [1], [0, 0, 1, 1], [], []>} : vector<8x36xbf16>, vector<36x128xbf16>, vector<8x128xf32> -> vector<8x128xf32>
    %31 = arith.addf %26, %30 : vector<8x128xf32>
    %cst_9 = arith.constant dense<0.000000e+00> : vector<8xf32>
    %32 = vector.multi_reduction <add>, %31, %cst_9 [1] : vector<8x128xf32> to vector<8xf32>
    %33 = vector.shape_cast %32 : vector<8xf32> to vector<8x1xf32>
    %c0_10 = arith.constant 0 : index
    %c0_11 = arith.constant 0 : index
    %c0_12 = arith.constant 0 : index
    %c0_13 = arith.constant 0 : index
    %34 = vector.load %arg6[%c0_10, %c0_11, %c0_12, %c0_13] : memref<1x1x8x1xf32, #tpu.memory_space<vmem>>, vector<1x1x8x1xf32>
    %35 = vector.shape_cast %34 : vector<1x1x8x1xf32> to vector<8x1xf32>
    %36 = vector.shape_cast %33 : vector<8x1xf32> to vector<1x1x8x1xf32>
    tpu.vector_store %arg6[%c0_10, %c0_11, %c0_12, %c0_13], %36 {strides = array<i32>} : memref<1x1x8x1xf32, #tpu.memory_space<vmem>>, vector<1x1x8x1xf32>,
    %37 = arith.mulf %31, %31 : vector<8x128xf32>
    %cst_14 = arith.constant dense<0.000000e+00> : vector<8xf32>
    %38 = vector.multi_reduction <add>, %37, %cst_14 [1] : vector<8x128xf32> to vector<8xf32>
    %39 = vector.shape_cast %38 : vector<8xf32> to vector<8x1xf32>
    %c0_15 = arith.constant 0 : index
    %c0_16 = arith.constant 0 : index
    %c0_17 = arith.constant 0 : index
    %c0_18 = arith.constant 0 : index
    %40 = vector.load %arg7[%c0_15, %c0_16, %c0_17, %c0_18] : memref<1x1x8x1xf32, #tpu.memory_space<vmem>>, vector<1x1x8x1xf32>
    %41 = vector.shape_cast %40 : vector<1x1x8x1xf32> to vector<8x1xf32>
    %42 = vector.shape_cast %39 : vector<8x1xf32> to vector<1x1x8x1xf32>
    tpu.vector_store %arg7[%c0_15, %c0_16, %c0_17, %c0_18], %42 {strides = array<i32>} : memref<1x1x8x1xf32, #tpu.memory_space<vmem>>, vector<1x1x8x1xf32>,
    %43 = arith.truncf %31 : vector<8x128xf32> to vector<8x128xbf16>
    %c0_19 = arith.constant 0 : index
    %c0_20 = arith.constant 0 : index
    %c0_21 = arith.constant 0 : index
    %44 = vector.load %arg5[%c0_19, %c0_20, %c0_21] : memref<1x8x128xbf16, #tpu.memory_space<vmem>>, vector<1x8x128xbf16>
    %45 = vector.shape_cast %44 : vector<1x8x128xbf16> to vector<8x128xbf16>
    %46 = vector.shape_cast %43 : vector<8x128xbf16> to vector<1x8x128xbf16>
    tpu.vector_store %arg5[%c0_19, %c0_20, %c0_21], %46 {strides = array<i32>} : memref<1x8x128xbf16, #tpu.memory_space<vmem>>, vector<1x8x128xbf16>,
    return
  }
  func.func @transform_0(%arg0: i32, %arg1: i32) -> (i32, i32, i32, i32) {
    %c0_i32 = arith.constant 0 : i32
    %c0_i32_0 = arith.constant 0 : i32
    %c0_i32_1 = arith.constant 0 : i32
    return %arg0, %arg1, %c0_i32, %c0_i32_0 : i32, i32, i32, i32
  }
  func.func @transform_1(%arg0: i32, %arg1: i32) -> (i32, i32, i32) {
    %c0_i32 = arith.constant 0 : i32
    %c0_i32_0 = arith.constant 0 : i32
    %c0_i32_1 = arith.constant 0 : i32
    %c0_i32_2 = arith.constant 0 : i32
    return %c0_i32, %c0_i32_0, %c0_i32_1 : i32, i32, i32
  }
  func.func @transform_2(%arg0: i32, %arg1: i32) -> (i32, i32) {
    %c0_i32 = arith.constant 0 : i32
    %c0_i32_0 = arith.constant 0 : i32
    %c0_i32_1 = arith.constant 0 : i32
    return %c0_i32, %c0_i32_0 : i32, i32
  }
  func.func @transform_3(%arg0: i32, %arg1: i32) -> (i32, i32, i32) {
    %c0_i32 = arith.constant 0 : i32
    %c0_i32_0 = arith.constant 0 : i32
    return %arg0, %c0_i32, %arg1 : i32, i32, i32
  }
  func.func @transform_4(%arg0: i32, %arg1: i32) -> (i32, i32, i32, i32) {
    %c0_i32 = arith.constant 0 : i32
    %c0_i32_0 = arith.constant 0 : i32
    %c0_i32_1 = arith.constant 0 : i32
    return %arg0, %arg1, %c0_i32, %c0_i32_0 : i32, i32, i32, i32
  }
  func.func @transform_5(%arg0: i32, %arg1: i32) -> (i32, i32, i32, i32) {
    %c0_i32 = arith.constant 0 : i32
    %c0_i32_0 = arith.constant 0 : i32
    %c0_i32_1 = arith.constant 0 : i32
    return %arg0, %arg1, %c0_i32, %c0_i32_0 : i32, i32, i32, i32
  }
}

</mosaic_0001>

<bundles_post_ra>
// kernel: tpu_custom_call.1
= control target key start
LH: loop header
LB: loop body
LE: loop exit
PB: predicated region body
PF: predicated region fallthrough
CT: control target
= control target key end

     0   :  { %s1427_s0 = inlined_call_operand.hbm [shape: bf16[2,2,4,162], index: 0, kind: input, shape index: {}]   ;;  %s1428_s1 = inlined_call_operand.hbm [shape: bf16[1,8,36], index: 1, kind: input, shape index: {}]   ;;  %s1429_s2 = inlined_call_operand.vmem [shape: bf16[2,128], index: 2, kind: input, shape index: {}]   ;;  %s1430_s3 = inlined_call_operand.hbm [shape: bf16[2,8,256], index: 3, kind: output, shape index: {0}]   ;;  %s1431_s4 = inlined_call_operand.vmem [shape: f32[2,2,8,1], index: 4, kind: output, shape index: {1}]   ;;  %s1432_s5 = inlined_call_operand.vmem [shape: f32[2,2,8,1], index: 5, kind: output, shape index: {2}]  }
   0x1   :  { %1442 = sst [smem:[#allocation16_spill]] %s1428_s1 }
   0x2   :  { %1443 = sst [smem:[#allocation17_spill]] %s1432_s5 }
   0x3   :  { %11 = vsyncpa [#allocation3], 0 }
   0x4   :  { %13 = vsyncpa [#allocation3 + $0x1], 0 }
   0x5   :  { %14 = vsyncpa [#allocation6], 0 }
   0x6   :  { %15 = vsyncpa [#allocation4], 0 }
   0x7   :  { %17 = vsyncpa [#allocation4 + $0x1], 0  ;;  %s1133_s18 = smov 0   ;;  %s1135_s19 = smov 0  }
   0x8   :  { %s1137_s20 = smov 0   ;;  %s1139_s21 = smov 0  }
   0x9   :  { %s1141_s22 = smov 0   ;;  %s1143_s23 = smov 0  }
   0xa   :  { %s1145_s24 = smov 0   ;;  %s1147_s25 = smov 0  }
   0xb LB: > { %1444 = sst [smem:[#allocation11_spill]] %s1054_s18  ;;  %s779_s26 = sadd.s32 4294967295, %s1082_s25   ;;  %s1082_s25 = sphi %s1147_s25, %s23_s25   ;;  %s1078_s24 = sphi %s1145_s24, %s1474_s24   ;;  %s1074_s23 = sphi %s1143_s23, %s1468_s23   ;;  %s1070_s22 = sphi %s1141_s22, %s1473_s22   ;;  %s1066_s21 = sphi %s1139_s21, %s1467_s21   ;;  %s1062_s20 = sphi %s1137_s20, %s1472_s20   ;;  %s1058_s19 = sphi %s1135_s19, %s1471_s19   ;;  %s1054_s18 = sphi %s1133_s18, %s1470_s18  }
   0xc   : > { %1445 = sst [smem:[#allocation12_spill]] %s1074_s23  ;;  %s780_s27 = sadd.s32 4294967294, %s1082_s25  }
   0xd   : > { %p57_p0 = scmp.ne.s32.totalorder %s1058_s19, %s1054_s18  ;;  %p1177_p1 = scmp.eq.s32.totalorder %s779_s26, 0 }
   0xe   : > { %p1181_p2 = scmp.eq.s32.totalorder %s779_s26, 3  ;;  %p131_p3 = scmp.eq.s32.totalorder %s780_s27, 3 }
   0xf   : > { %s1446_s28 = scalar_select %p1177_p1, 1, 0 }
  0x10   : > { %s1447_s29 = scalar_select %p1181_p2, 1, 0 }
  0x11   : > { %p1187_p4 = por %p1177_p1, %p57_p0  ;;  %p781_p5 = scmp.ge.s32.totalorder %s1082_s25, 1 }
  0x12   : > { %p1192_p6 = por %p131_p3, %p57_p0  ;;  %p194_p7 = scmp.lt.s32.totalorder %s1082_s25, 5 }
  0x13   : > { %s1448_s30 = scalar_select %p1187_p4, 1, 0 }
  0x14   : > { %s1449_s6 = scalar_select %p1192_p6, 1, 0 }
  0x15   : > { %p1197_p8 = pnand %p781_p5, %p194_p7  ;;  %s1084_s8 = smov [#allocation5]  }
  0x16   : > { %1450 = sst [smem:[#allocation13_spill]] %s1449_s6  ;;  %s207_s9 = sshll.u32 %s1084_s8, 4  ;;  %s208_s9 = int_to_ptr.vmem [resolvable:$true] %s207_s9 }
  0x17   : > { %s1451_s7 = scalar_select %p1197_p8, 1, 0 }
  0x18   : > { %p824_p9 = pneg %p1197_p8  ;;  %s32_s11 = sadd.s32 1, %s1074_s23 }
  0x19   : > { %s1453_s1 = sld [smem:[#allocation16_spill]] }
  0x1a   : > { %p1205_p10 = pnand %p824_p9, %p1177_p1 }
  0x1c   : > { %p924_p12 = pneg %p1205_p10 }
  0x1f   : > { %s922_s14 = scalar_lea.hbm %s1453_s1, 64 }
  0x20   : > { %p923_p11 = scmp.ne.s32.totalorder %s1453_s1, %s922_s14  ;;  %p929_p3 = scmp.lt.u32.totalorder %s922_s14, %s1453_s1 }
  0x22   : > { %p925_p13 = pnand %p924_p12, %p923_p11 }
  0x24   : > { %p926_p0 = pneg %p925_p13 }
  0x26   : > { %p931_p5 = pnand %p929_p3, %p926_p0 }
  0x28   : > { %934 = shalt.err (!%p931_p5)
}
  0x29   : > { %s935_s27 = scalar_lea.vmem %s208_s9, 64  ;;  %p943_p1 = scmp.lt.s32.totalorder %s208_s9, %s208_s9 }
  0x2a   : > { %p936_p7 = scmp.ne.s32.totalorder %s208_s9, %s935_s27  ;;  %p944_p4 = scmp.lt.s32.totalorder %s935_s27, %s935_s27 }
  0x2c   : > { %p938_p9 = pnand %p936_p7, %p924_p12  ;;  %p945_p8 = por %p944_p4, %p943_p1 }
  0x2e   : > { %p939_p6 = pneg %p938_p9 }
  0x30   : > { %p946_p2 = pnand %p945_p8, %p939_p6 }
  0x32   : > { %949 = shalt.err (!%p946_p2)
}
  0x33   : > { %827 = dma.hbm_to_vmem [thread:$0]  (!%p1205_p10), %s1453_s1, 64, %s208_s9, [#allocation6]  }
  0x34   : > { %p33_p1 = scmp.ge.s32.totalorder %s32_s11, 2  ;;  %s35_s13 = sadd.s32 1, %s1078_s24 }
  0x35   : > { %s44_s14 = sadd.s32 1, %s1062_s20  ;;  %p51_p2 = scmp.ne.s32.totalorder %s1062_s20, %s1058_s19 }
  0x36   : > { %s1476_s11 = smov (%p33_p1, %s32_s11), 0  ;;  %s1478_s13 = smov (!%p33_p1, %s35_s13), %s1078_s24 }
  0x37   : > { %1454 = sst [smem:[#allocation14_spill]] %s1476_s11  ;;  %s40_s10 = ssub.s32 %s1074_s23, %s1476_s11 }
  0x38   : > { %p52_p4 = scmp.eq.s32.totalorder %s1082_s25, 0  ;;  %p37_p6 = scmp.ge.s32.totalorder %s1478_s13, 2 }
  0x39   : > { %p1455_p8 = scmp.ne.s32.totalorder %s1447_s29, 0  ;;  %p837_p12 = scmp.lt.s32.totalorder %s1082_s25, 4 }
  0x3a   : > { %p1242_p10 = por %p52_p4, %p51_p2  ;;  %s1480_s13 = smov (%p37_p6, %s1478_s13), 0 }
  0x3b   : > { %p1238_p11 = por %p1455_p8, %p51_p2  ;;  %1458 = sst [smem:[#allocation15_spill]] %s1480_s13 }
  0x3c   : > { %s221_s16 = sand.u32 1, %s1062_s20   ;;  %s785_s17 = sshll.u32 %s1074_s23, 1 }
  0x3d   : > { %s39_s26 = ssub.s32 %s1078_s24, %s1480_s13  ;;  %s784_s8 = sshll.u32 %s221_s16, 2 }
  0x3e   : > { %s41_s27 = sor.u32 %s40_s10, %s39_s26  ;;  %s786_s29 = sshll.u32 %s1078_s24, 2 }
  0x3f   : > { %p42_p13 = scmp.eq.s32.totalorder %s41_s27, 0  ;;  %s225_s12 = scalar_lea.vmem [#allocation2], %s784_s8 }
  0x40   : > { %s235_s1 = sshll.u32 %s225_s12, 4  ;;  %s231_s6 = sadd.s32 %s786_s29, %s785_s17  ;;  %s1257_s1 = int_to_ptr.vmem [resolvable:$true] %s235_s1 }
  0x41   : > { %s1255_s11 = scalar_select %p42_p13, %s1062_s20, %s44_s14  }
  0x42   : > { %s787_s18 = sshll.u32 %s231_s6, 5  ;;  %p1263_p0 = pnand %p837_p12, %p1242_p10 }
  0x43   : > { %s1270_s10 = scalar_lea.hbm %s1427_s0, %s787_s18  ;;  %s222_s14 = scalar_lea.sflag [#allocation3], %s221_s16 }
  0x44   : > { %s950_s17 = scalar_lea.hbm %s1270_s10, 64  ;;  %p952_p5 = pneg %p1263_p0 }
  0x45   : > { %p951_p3 = scmp.ne.s32.totalorder %s1270_s10, %s950_s17  ;;  %s955_s23 = scalar_lea.hbm %s1427_s0, 256 }
  0x46   : > { %p956_p1 = scmp.lt.u32.totalorder %s1270_s10, %s1427_s0  ;;  %p957_p2 = scmp.lt.u32.totalorder %s955_s23, %s950_s17 }
  0x47   : > { %p953_p7 = pnand %p952_p5, %p951_p3  ;;  %p959_p6 = scmp.lt.u32.totalorder %s950_s17, %s1270_s10 }
  0x48   : > { %p958_p4 = por %p957_p2, %p956_p1 }
  0x49   : > { %p954_p9 = pneg %p953_p7 }
  0x4a   : > { %p960_p8 = por %p959_p6, %p958_p4 }
  0x4c   : > { %p961_p10 = pnand %p960_p8, %p954_p9 }
  0x4e   : > { %964 = shalt.err (!%p961_p10)
}
  0x4f   : > { %s965_s16 = scalar_lea.vmem %s1257_s1, 64  ;;  %s1085_s26 = smov [#allocation2]  }
  0x50   : > { %p966_p12 = scmp.ne.s32.totalorder %s1257_s1, %s965_s16  ;;  %s970_s27 = sshll.u32 %s1085_s26, 4  ;;  %s971_s27 = int_to_ptr.vmem [resolvable:$false] %s970_s27 }
  0x51   : > { %s972_s8 = scalar_lea.vmem %s971_s27, 128  ;;  %p973_p7 = scmp.lt.s32.totalorder %s1257_s1, %s971_s27 }
  0x52   : > { %p968_p13 = pnand %p966_p12, %p952_p5  ;;  %p974_p1 = scmp.lt.s32.totalorder %s972_s8, %s965_s16 }
  0x54   : > { %p969_p3 = pneg %p968_p13  ;;  %p975_p2 = por %p974_p1, %p973_p7 }
  0x56   : > { %p976_p4 = pnand %p975_p2, %p969_p3 }
  0x58   : > { %979 = shalt.err (!%p976_p4)
}
  0x59   : > { %831 = dma.hbm_to_vmem [thread:$0]  (!%p1263_p0), %s1270_s10, 64, %s1257_s1, %s222_s14  }
  0x5a   : > { %p1460_p9 = scmp.ne.s32.totalorder %s1451_s7, 0 }
  0x5b   : > { %s1300_s29 = sand.u32 (!%p1460_p9), 1, %s1058_s19   ;;  %p1461_p5 = scmp.ne.s32.totalorder (!%p1460_p9), %s1448_s30, 0 }
  0x5c   : > { %244 = sbr.rel (%p1460_p9) target bundleno = 738 (0x2e2), region = 32  ;;  %s789_s12 = sshll.u32 (!%p1460_p9), %s1300_s29, 2 }
  0x5d   : > { %s247_s17 = scalar_lea.sflag (!%p1460_p9), [#allocation3], %s1300_s29  ;;  %s250_s6 = scalar_lea.vmem (!%p1460_p9), [#allocation2], %s789_s12 }
  0x63   : > { %1041 = dma.done.wait (%p1461_p5), %s247_s17, 64  }
  0x64   : > { %1043 = vsyncadd (%p1461_p5), %s247_s17, 4294967232  ;;  %p1462_p0 = scmp.ne.s32.totalorder %s1446_s28, 0 }
  0x66   : > { %1045 = dma.done.wait (%p1462_p0), [#allocation6], 64  }
  0x67   : > { %1047 = vsyncadd (%p1462_p0), [#allocation6], 4294967232  ;;  %v319_v0 = vlaneseq  ;;  %v1086_v1 = vmov 1983009808   ;;  %v315_v5 = vld [vmem:[%s1429_s2] sm:$0x1] }
  0x68   : > { %v333_v2 = vunpack.c.l.s4 %v1086_v1  ;;  %v324_v7 = vshrl.u32 %v315_v5, 16  ;;  %v317_v8 = vpack.i.b16 %v315_v5, %v315_v5  ;;  %v1321_v12 = vld [vmem:[%s250_s6] sm:$0xf]  ;;  %s1087_s28 = smov 16   ;;  %s1088_s30 = smov 18   ;;  %vm357_vm0 = vcmask 130048  }
  0x69   : > { %v320_v3 = vshrl.u32 %v319_v0, 7  ;;  %v383_v16 = vcombine.low %v1321_v12, %v1321_v12  ;;  %s1089_s7 = smov 2   ;;  %s1090_s10 = smov 32   ;;  %vm342_vm1 = vcmask 15360   ;;  %vm364_vm2 = vcmask 146432  }
  0x6a   : > { %v334_v4 = vunpack.c.0.s8 %v333_v2  ;;  %v325_v9 = vpack.i.b16 %v324_v7, %v324_v7  ;;  %s1091_s14 = smov 34   ;;  %s1092_s9 = smov 127   ;;  %vm371_vm3 = vcmask 261120   ;;  %v1094_v39 = vmov 0.0  }
  0x6b   : > { %v321_v6 = vsub.s32 0, %v320_v3  ;;  %s1093_s23 = smov 111   ;;  %806 = vmatprep.subr.bf16.mxu0 %v1094_v39  ;;  %s1095_s13 = smov 96   ;;  %vm378_vm4 = vcmask 277504   ;;  %vm1099_vm5 = vmmov 0   ;;  %vm403_vm6 = vcmask 1039360  }
  0x6c   : > { %v1317_v10 = vsub.s32 %v334_v4, %v320_v3  ;;  %s1096_s18 = smov 126   ;;  %s1097_s16 = smov 112   ;;  %812 = vmatprep.mubr.msk.bf16.mxu0 %vm1099_vm5, %v1094_v39  ;;  %vm418_vm7 = vcmask 1031168   ;;  %vm496_vm8 = vcmask 1041408   ;;  %vm434_vm9 = vcmask 916480  }
  0x6d   : > { %v1319_v11 = vrot.slane %v317_v8, %v321_v6  ;;  %v330_v13 = vrot.slane %v325_v9, %v321_v6  ;;  %s1098_s26 = smov 110   ;;  %s1100_s27 = smov 95   ;;  %vm500_vm10 = vcmask 1043456   ;;  %vm503_vm11 = vcmask 1045504  }
  0x6e   : > { %v1329_v17 = vrot.slane %v383_v16, %v1317_v10  ;;  %v397_v19 = vrot.slane %v1321_v12, %v1317_v10  ;;  %s1101_s8 = smov 94   ;;  %vm441_vm12 = vcmask 908288   ;;  %vm457_vm13 = vcmask 900096   ;;  %s276_s17 = scalar_lea.vmem [#allocation7], %s789_s12 }
  0x6f   : > { %v353_v14 = vrot.slane %v1319_v11, %v1317_v10  ;;  %v338_v15 = vrot.slane %v330_v13, %v1317_v10  ;;  %v323_v62 = vmul.bf16 %v1319_v11, %v1321_v12  ;;  %vm472_vm14 = vcmask 785408   ;;  %s798_s6 = sshll.u32 %s1070_s22, 1 }
  0x70   : > { %v398_v18 = vcombine.high %v1329_v17, %v1329_v17  ;;  %v436_v20 = vcombine.high %v397_v19, %v397_v19  ;;  %v474_v53 = vcombine.low %v1329_v17, %v1329_v17  ;;  %vm479_vm15 = vcmask 777216   ;;  %s601_s1 = sadd.s32 %s1066_s21, %s798_s6 }
  0x71   : > { %354 = vrot.lane.b32.xlu0 %v353_v14, %s1087_s28  ;;  %361 = vrot.lane.b32.xlu1 %v338_v15, %s1088_s30  ;;  %s799_s5 = sshll.u32 %s601_s1, 6 }
  0x75   : > { %339 = vrot.lane.b32.xlu0 %v338_v15, %s1089_s7  ;;  %368 = vrot.lane.b32.xlu1 %v353_v14, %s1090_s10  ;;  %s1369_s7 = scalar_lea.hbm %s1430_s3, %s799_s5  ;;  %s605_s10 = sshll.u32 %s276_s17, 4  ;;  %s606_s10 = int_to_ptr.vmem [resolvable:$true] %s605_s10 }
  0x79   : > { %375 = vrot.lane.b32.xlu0 %v338_v15, %s1091_s14  ;;  %399 = vrot.lane.b32.xlu1 %v1329_v17, %s1092_s9  ;;  %s574_s14 = scalar_lea.sflag [#allocation4], %s1300_s29 }
  0x7d   : > { %401 = vrot.lane.b32.xlu0 %v398_v18, %s1092_s9  ;;  %437 = vrot.lane.b32.xlu1 %v397_v19, %s1093_s23  ;;  %s980_s9 = scalar_lea.vmem %s606_s10, 64 }
  0x7e   : > { %p981_p6 = scmp.ne.s32.totalorder %s606_s10, %s980_s9 }
  0x80   : > { %p982_p8 = pnand %p981_p6, %p1238_p11 }
  0x81   : > { %439 = vrot.lane.b32.xlu0 %v436_v20, %s1093_s23  ;;  %s1102_s23 = smov [#allocation7]  }
  0x82   : > { %p983_p10 = pneg %p982_p8 }
  0xe3   : > { %v355_v21 = vpop.permute.xlu0 %354  ;;  %v362_v22 = vpop.permute.xlu1 %361 }
  0xe4   : > { %v356_v23 = vrot.slane %v355_v21, 6  ;;  %v363_v25 = vrot.slane %v362_v22, 6 }
  0xe6   : > { %v358_v28 = vsel %vm357_vm0, %v356_v23, %v355_v21  ;;  %v365_v31 = vsel %vm364_vm2, %v363_v25, %v362_v22  ;;  %vm494_vm0 = vcmask 769024   ;;  %v515_v23 = vld [vmem:[#allocation5] sm:$0xf] }
  0xe7   : > { %v340_v24 = vpop.permute.xlu0 %339  ;;  %v369_v27 = vpop.permute.xlu1 %368  ;;  %v360_v33 = vmul.bf16 %v358_v28, %v1321_v12  ;;  %v367_v36 = vmul.bf16 %v365_v31, %v1321_v12 }
  0xe8   : > { %v341_v26 = vrot.slane %v340_v24, 6  ;;  %v370_v29 = vrot.slane %v369_v27, 6 }
  0xe9   : > { %v421_v40 = vcombine.low %v360_v33, %v360_v33  ;;  %v444_v44 = vcombine.low %v367_v36, %v367_v36 }
  0xea   : > { %v343_v30 = vsel %vm342_vm1, %v341_v26, %v340_v24  ;;  %v372_v32 = vsel %vm371_vm3, %v370_v29, %v369_v27  ;;  %vm516_vm1 = vcmask 293888  }
  0xeb   : > { %v374_v34 = vmul.bf16 %v372_v32, %v1321_v12  ;;  %v345_v35 = vmul.bf16 %v343_v30, %v1321_v12  ;;  %v376_v38 = vpop.permute.xlu0 %375  ;;  %v428_v46 = vrot.slane %v421_v40, %v1317_v10  ;;  %v451_v48 = vrot.slane %v444_v44, %v1317_v10  ;;  %v400_v56 = vpop.permute.xlu1 %399 }
  0xec   : > { %v377_v43 = vrot.slane %v376_v38, 6 }
  0xed   : > { %v466_v37 = vrot.slane %v374_v34, %v1317_v10  ;;  %v412_v42 = vrot.slane %v345_v35, %v1317_v10  ;;  %v429_v50 = vcombine.low %v428_v46, %v428_v46  ;;  %v452_v51 = vcombine.high %v451_v48, %v451_v48 }
  0xee   : > { %v379_v47 = vsel %vm378_vm4, %v377_v43, %v376_v38 }
  0xef   : > { %470 = vrot.lane.b32.xlu0 %v466_v37, %s1095_s13  ;;  %v467_v41 = vcombine.low %v466_v37, %v466_v37  ;;  %v413_v45 = vcombine.low %v412_v42, %v412_v42  ;;  %v381_v49 = vmul.bf16 %v379_v47, %v1321_v12  ;;  %v402_v55 = vpop.permute.xlu0 %401  ;;  %v438_v58 = vpop.permute.xlu1 %437 }
  0xf0   : > { %v404_v0 = vsel %vm403_vm6, %v400_v56, %v402_v55 }
  0xf1   : > { %468 = vrot.lane.b32.xlu1 %v467_v41, %s1095_s13  ;;  %v488_v52 = vrot.slane %v381_v49, %v1317_v10  ;;  %v499_v3 = vsel %vm496_vm8, %v323_v62, %v404_v0  ;;  %s984_s13 = sshll.u32 %s1102_s23, 4  ;;  %s985_s13 = int_to_ptr.vmem [resolvable:$false] %s984_s13 }
  0xf2   : > { %s986_s12 = scalar_lea.vmem %s985_s13, 128  ;;  %p987_p12 = scmp.lt.s32.totalorder %s606_s10, %s985_s13 }
  0xf3   : > { %416 = vrot.lane.b32.xlu0 %v412_v42, %s1096_s18  ;;  %v489_v54 = vcombine.high %v488_v52, %v488_v52  ;;  %v440_v57 = vpop.permute.xlu0 %439  ;;  %p988_p13 = scmp.lt.s32.totalorder %s986_s12, %s980_s9 }
  0xf4   : > { %v442_v10 = vsel %vm441_vm12, %v438_v58, %v440_v57 }
  0xf5   : > { %414 = vrot.lane.b32.xlu1 %v413_v45, %s1096_s18  ;;  %p989_p3 = por %p988_p13, %p987_p12 }
  0xf7   : > { %432 = vrot.lane.b32.xlu0 %v428_v46, %s1097_s16  ;;  %p990_p7 = pnand %p989_p3, %p983_p10 }
  0xf9   : > { %430 = vrot.lane.b32.xlu1 %v429_v50, %s1097_s16 }
  0xfb   : > { %455 = vrot.lane.b32.xlu0 %v452_v51, %s1098_s26 }
  0xfd   : > { %453 = vrot.lane.b32.xlu1 %v451_v48, %s1098_s26 }
  0xff   : > { %477 = vrot.lane.b32.xlu0 %v1329_v17, %s1100_s27 }
 0x101   : > { %475 = vrot.lane.b32.xlu1 %v474_v53, %s1100_s27 }
 0x103   : > { %492 = vrot.lane.b32.xlu0 %v489_v54, %s1101_s8 }
 0x105   : > { %490 = vrot.lane.b32.xlu1 %v488_v52, %s1101_s8 }
 0x161   : > { %v471_v59 = vpop.permute.xlu0 %470 }
 0x163   : > { %v469_v60 = vpop.permute.xlu1 %468 }
 0x164   : > { %v473_v14 = vsel %vm472_vm14, %v469_v60, %v471_v59 }
 0x165   : > { %v417_v61 = vpop.permute.xlu0 %416 }
 0x167   : > { %v415_v63 = vpop.permute.xlu1 %414 }
 0x168   : > { %v419_v1 = vsel %vm418_vm7, %v415_v63, %v417_v61 }
 0x169   : > { %v433_v2 = vpop.permute.xlu0 %432  ;;  %v502_v6 = vsel %vm500_vm10, %v499_v3, %v419_v1 }
 0x16b   : > { %v431_v4 = vpop.permute.xlu1 %430 }
 0x16c   : > { %v435_v5 = vsel %vm434_vm9, %v431_v4, %v433_v2 }
 0x16d   : > { %v456_v7 = vpop.permute.xlu0 %455  ;;  %v505_v8 = vsel %vm503_vm11, %v502_v6, %v435_v5 }
 0x16e   : > { %807 = vmatpush3.bf16.msra.mxu0 %v505_v8 }
 0x16f   : > { %v454_v9 = vpop.permute.xlu1 %453  ;;  %808 = vmatprep.subr.bf16.mxu0 %v1094_v39 }
 0x170   : > { %v458_v11 = vsel %vm457_vm13, %v454_v9, %v456_v7 }
 0x171   : > { %v509_v12 = vsel %vm496_vm8, %v442_v10, %v458_v11  ;;  %v478_v13 = vpop.permute.xlu0 %477 }
 0x172   : > { %v511_v17 = vsel %vm500_vm10, %v509_v12, %v473_v14 }
 0x173   : > { %v476_v15 = vpop.permute.xlu1 %475 }
 0x174   : > { %v480_v16 = vsel %vm479_vm15, %v476_v15, %v478_v13 }
 0x175   : > { %v513_v18 = vsel %vm503_vm11, %v511_v17, %v480_v16  ;;  %v493_v19 = vpop.permute.xlu0 %492 }
 0x176   : > { %809 = vmatpush3.bf16.msra.mxu0 %v513_v18 }
 0x177   : > { %v491_v20 = vpop.permute.xlu1 %490  ;;  %810 = vmatprep.subr.bf16.mxu0 %v1094_v39 }
 0x178   : > { %v495_v21 = vsel %vm494_vm0, %v491_v20, %v493_v19 }
 0x179   : > { %v521_v22 = vsel %vm496_vm8, %v495_v21, 0 }
 0x17a   : > { %811 = vmatpush3.bf16.msra.mxu0 %v521_v22 }
 0x17d   : > { %813 = vmatmul.mubr.msk.bf16.vlgmr.msra.gmra.mrb[0].mxu0 %vm516_vm1, %v515_v23 }
 0x250   : > { %v557_v24 = vpop.f32.mrb[0].mxu0 }
 0x251   : > { %v571_v25 = vpack.c.bf16 %v557_v24, %v557_v24  ;;  %563 = vadd.xlane.f32.xlu1 %v557_v24  ;;  %v814_v26 = vpop.f32.mrb[1].mxu0  ;;  %v567_v27 = vmul.f32 %v557_v24, %v557_v24 }
 0x252   : > { %v560_v28 = vpop.f32.mrb[2].mxu0 }
 0x253   : > { %568 = vadd.xlane.f32.xlu0 %v567_v27  ;;  %v815_v29 = vpop.f32.mrb[3].mxu0  ;;  %572 = vst [vmem:[%s276_s17] sm:$0xf] %v571_v25 }
 0x254   : > { %993 = shalt.err (!%p990_p7)
}
 0x255   : > { %s994_s29 = scalar_lea.hbm %s1369_s7, 64  ;;  %s998_s26 = scalar_lea.hbm %s1430_s3, 256 }
 0x256   : > { %p995_p1 = scmp.ne.s32.totalorder %s1369_s7, %s994_s29  ;;  %p999_p9 = scmp.lt.u32.totalorder %s1369_s7, %s1430_s3 }
 0x257   : > { %p1000_p5 = scmp.lt.u32.totalorder %s998_s26, %s994_s29  ;;  %p1002_p6 = scmp.lt.u32.totalorder %s994_s29, %s1369_s7 }
 0x258   : > { %p996_p2 = pnand %p995_p1, %p1238_p11 }
 0x259   : > { %p1001_p0 = por %p1000_p5, %p999_p9 }
 0x25a   : > { %p997_p4 = pneg %p996_p2 }
 0x25b   : > { %p1003_p8 = por %p1002_p6, %p1001_p0 }
 0x25d   : > { %p1004_p10 = pnand %p1003_p8, %p997_p4 }
 0x25f   : > { %1007 = shalt.err (!%p1004_p10)
}
 0x260   : > { %822 = dma.vmem_to_hbm [thread:$0]  (%p1238_p11), %s606_s10, 64, %s1369_s7, %s574_s14   ;;  %vm565_vm2 = vcmask 7168  }
 0x261   : > { %p297_p12 = scmp.lt.s32.totalorder %s1070_s22, 1  ;;  %p299_p13 = scmp.lt.s32.totalorder %s1066_s21, 1 }
 0x262   : > { %s1463_s23 = sld [smem:[#allocation17_spill]] }
 0x263   : > { %s1482_s22 = smov (!%p297_p12, %s1070_s22), 1  ;;  %s1484_s21 = smov (!%p299_p13, %s1066_s21), 1 }
 0x264   : > { %s792_s17 = sshll.u32 %s1482_s22, 1 }
 0x265   : > { %s302_s6 = sadd.s32 %s792_s17, %s1484_s21 }
 0x266   : > { %s793_s1 = sshll.u32 %s302_s6, 3 }
 0x267   : > { %s304_s30 = scalar_lea.vmem %s1431_s4, %s793_s1 }
 0x268   : > { %s312_s13 = scalar_lea.vmem %s1463_s23, %s793_s1 }
 0x2de   : > { %v564_v30 = vpop.xlane.xlu1 %563 }
 0x2df   : > { %566 = vst.msk [vmem:[%s304_s30] sm:$0xff] %vm565_vm2, %v564_v30 }
 0x2e0   : > { %v569_v31 = vpop.xlane.xlu0 %568 }
 0x2e1   : > { %570 = vst.msk [vmem:[%s312_s13] sm:$0xff] %vm565_vm2, %v569_v31 }
 0x2e2 PF: > { %s1464_s7 = sld [smem:[#allocation11_spill]]  ;;  %s1465_s10 = sld [smem:[#allocation13_spill]] }
 0x2e3   : > { %p839_p11 = scmp.ge.s32.totalorder %s1082_s25, 2 }
 0x2e8   : > { %s623_s21 = sand.u32 1, %s1464_s7   ;;  %p1466_p3 = scmp.ne.s32.totalorder %s1465_s10, 0 }
 0x2e9   : > { %s624_s22 = scalar_lea.sflag [#allocation4], %s623_s21 }
 0x2ea   : > { %p833_p7 = pnand %p839_p11, %p1466_p3 }
 0x2ec   : > { %1049 = dma.done.wait (!%p833_p7), %s624_s22, 64  }
 0x2ed   : > { %1051 = vsyncadd (!%p833_p7), %s624_s22, 4294967232  ;;  %s23_s25 = sadd.s32 1, %s1082_s25   ;;  %s1467_s21 = sld [smem:[#allocation12_spill]] }
 0x2ee   : > { %p20_p1 = scmp.ge.s32.totalorder %s23_s25, 6   ;;  %s1468_s23 = sld [smem:[#allocation14_spill]] }
 0x2ef   : > { %s1469_s14 = sld [smem:[#allocation15_spill]]  ;;  %s1470_s18 = smov %s1058_s19 }
 0x2f0   : > { %s1471_s19 = smov %s1062_s20  ;;  %s1472_s20 = smov %s1255_s11 }
 0x2f1   : > { %s1473_s22 = smov %s1078_s24  ;;  %22 = sbr.rel (!%p20_p1) target bundleno = 11 (0xb), region = 105 }
 0x2f5   : > { %s1474_s24 = smov %s1469_s14 }
 0x2f8   :  { %651 = vsyncpa [#allocation3], 1 }
 0x2f9   :  { %653 = vsyncpa [#allocation3 + $0x1], 1 }
 0x2fa   :  { %654 = vsyncpa [#allocation6], 1 }
 0x2fb   :  { %655 = vsyncpa [#allocation4], 1 }
 0x2fc   :  { %657 = vsyncpa [#allocation4 + $0x1], 1 }

</bundles_post_ra>
